<compile_context>
chip_gen: v6e
topology: v6e:2x2x1
jax: 0.10.0
libtpu: 0.0.40
codegen_flags: <defaults>
</compile_context>

<pallas_src>
import functools

import jax
import jax.numpy as jnp
from jax.experimental import pallas as pl
from jax.experimental.pallas import tpu as pltpu

LANES = 128
SUBLANES = 8
MAX_BLOCK_ROWS = 8192  # 8192 x 128 f32 = 4 MiB per operand tile


def _round_up(x, m):
    return ((x + m - 1) // m) * m


def _masked_l2_kernel(x_ref, y_ref, m_ref, out_ref, acc_ref, *,
                      block_rows, total_rows, steps_per_core, masking_needed):
    """Grid = (cores, row-tile steps).  Inner axis is a sequential reduction."""
    c = pl.program_id(0)
    i = pl.program_id(1)
    n_i = pl.num_programs(1)

    @pl.when(i == 0)
    def _():
        acc_ref[...] = jnp.zeros_like(acc_ref)

    # Pure VPU work; cast to f32 in-register (inputs stay native dtype in HBM).
    d = x_ref[...].astype(jnp.float32) - y_ref[...].astype(jnp.float32)
    val = d * d * m_ref[...].astype(jnp.float32)

    def accumulate(v):
        # (block_rows, 128) -> (block_rows//8, 8, 128): last two dims equal the
        # vreg tile, so the reshape is free; the sum is a VALU add tree into a
        # single-vreg accumulator (no big acc read-modify-write).
        acc_ref[...] += v.reshape(-1, SUBLANES, LANES).sum(axis=0)

    if masking_needed:  # static Python bool
        g = c * steps_per_core + i            # un-clamped global block index
        block_start = g * block_rows
        is_full = (block_start + block_rows) <= total_rows

        @pl.when(is_full)
        def _():
            accumulate(val)

        @pl.when(jnp.logical_not(is_full))
        def _():
            # Partial / out-of-range block: rows past `total_rows` hold garbage
            # (Pallas partial block or a clamped duplicate block) — mask them.
            row = jax.lax.broadcasted_iota(jnp.int32, val.shape, 0)
            valid = (block_start + row) < total_rows
            accumulate(jnp.where(valid, val, jnp.float32(0.0)))
    else:
        accumulate(val)

    # Each core writes its own lane-dense (8, 128) partial-sum row-group once.
    @pl.when(i == n_i - 1)
    def _():
        out_ref[...] = acc_ref[...]


def _as_lane_dense_2d(a, numel, rows):
    """View `a` as (rows, LANES).  Free reshape when numel % LANES == 0."""
    flat = a.reshape(-1)
    if numel != rows * LANES:
        # TODO(synk): rare ragged-lane fallback; jnp.pad copies the array once
        # (zero padding contributes 0 to the masked sum).  A flat-index mask
        # over a pl.ANY ref with manual DMA would avoid the copy.
        flat = jnp.pad(flat, (0, rows * LANES - numel))
    return flat.reshape(rows, LANES)


def hpfl2(X, Y, mask):
    """Mask-guided L2:  sum((X - Y)^2 * mask) / X.size  — returns f32 scalar."""
    assert X.shape == Y.shape == mask.shape
    numel = X.size
    rows = pl.cdiv(numel, LANES)

    x2 = _as_lane_dense_2d(X, numel, rows)
    y2 = _as_lane_dense_2d(Y, numel, rows)
    m2 = _as_lane_dense_2d(mask, numel, rows)

    # Block rows: a multiple of 8 so the in-kernel (n, 8, 128) pre-reduce is a
    # free reshape; capped at MAX_BLOCK_ROWS (4 MiB/operand tile).
    block_rows = min(MAX_BLOCK_ROWS, _round_up(rows, SUBLANES))
    num_blocks = pl.cdiv(rows, block_rows)

    # Two-TensorCore split (v7x): leading "parallel" axis of size 2 so each TC
    # streams half of the blocks.  Skip the split when the one clamped
    # duplicate block it can introduce would be a noticeable fraction of the
    # traffic (tiny inputs / small odd block counts); no effect on v5e/v6e.
    if num_blocks >= 2 and (num_blocks % 2 == 0 or num_blocks >= 8):
        num_cores = 2
    else:
        num_cores = 1
    steps_per_core = pl.cdiv(num_blocks, num_cores)

    masking_needed = (rows % block_rows != 0) or (
        steps_per_core * num_cores != num_blocks)

    def in_index(c, i):
        # Clamp so the DMA window stays in bounds; the kernel masks the
        # duplicate / partial block's invalid rows itself.
        return (jnp.minimum(c * steps_per_core + i, num_blocks - 1), 0)

    in_spec = pl.BlockSpec((block_rows, LANES), in_index)
    out_spec = pl.BlockSpec((SUBLANES, LANES), lambda c, i: (c, 0))

    bytes_accessed = numel * (X.dtype.itemsize + Y.dtype.itemsize
                              + mask.dtype.itemsize) \
        + num_cores * SUBLANES * LANES * 4

    partials = pl.pallas_call(
        functools.partial(
            _masked_l2_kernel,
            block_rows=block_rows,
            total_rows=rows,
            steps_per_core=steps_per_core,
            masking_needed=masking_needed,
        ),
        out_shape=jax.ShapeDtypeStruct((num_cores * SUBLANES, LANES),
                                       jnp.float32),
        grid_spec=pltpu.PrefetchScalarGridSpec(
            num_scalar_prefetch=0,
            grid=(num_cores, steps_per_core),
            in_specs=[in_spec, in_spec, in_spec],
            out_specs=out_spec,
            scratch_shapes=[pltpu.VMEM((SUBLANES, LANES), jnp.float32)],
        ),
        compiler_params=pltpu.CompilerParams(
            dimension_semantics=("parallel", "arbitrary"),
            vmem_limit_bytes=32 * 1024 * 1024,
        ),
        cost_estimate=pl.CostEstimate(
            flops=4 * numel, transcendentals=0, bytes_accessed=bytes_accessed),
    )(x2, y2, m2)

    # Tiny final reduce of the per-core partial vregs + the 1/numel scale.
    return jnp.sum(partials) * jnp.float32(1.0 / float(numel))


def _reference(X, Y, mask):
    return jnp.sum(jnp.square(X - Y) * mask) / X.size


if __name__ == "__main__":
    key = jax.random.PRNGKey(0)

    # Primary test: small NCHW shape consistent with the module.
    kx, ky, km = jax.random.split(key, 3)
    B, C, H, W = 2, 4, 16, 16
    X = jax.random.normal(kx, (B, C, H, W), dtype=jnp.float32)
    Y = jax.random.normal(ky, (B, C, H, W), dtype=jnp.float32)
    mask = jax.random.uniform(km, (B, C, H, W), dtype=jnp.float32)

    score = jax.block_until_ready(hpfl2(X, Y, mask))
    ref = _reference(X, Y, mask)
    assert jnp.allclose(score, ref, rtol=1e-5, atol=1e-6), (score, ref)

    # Single large block (rows = 4112, one grid step, no masking).
    kx2, ky2, km2 = jax.random.split(jax.random.PRNGKey(1), 3)
    shape2 = (2, 4, 256, 257)
    X2 = jax.random.normal(kx2, shape2, dtype=jnp.float32)
    Y2 = jax.random.normal(ky2, shape2, dtype=jnp.float32)
    mask2 = jax.random.uniform(km2, shape2, dtype=jnp.float32)
    score2 = jax.block_until_ready(hpfl2(X2, Y2, mask2))
    ref2 = _reference(X2, Y2, mask2)
    assert jnp.allclose(score2, ref2, rtol=2e-4, atol=1e-6), (score2, ref2)

    # Two-core split + partial last block masking (rows = 8292 > 8192).
    kx3, ky3, km3 = jax.random.split(jax.random.PRNGKey(2), 3)
    shape3 = (2, 4, 8292, 16)
    X3 = jax.random.normal(kx3, shape3, dtype=jnp.float32)
    Y3 = jax.random.normal(ky3, shape3, dtype=jnp.float32)
    mask3 = jax.random.uniform(km3, shape3, dtype=jnp.float32)
    score3 = jax.block_until_ready(hpfl2(X3, Y3, mask3))
    ref3 = _reference(X3, Y3, mask3)
    assert jnp.allclose(score3, ref3, rtol=2e-4, atol=1e-6), (score3, ref3)

    # Ragged-lane path (numel % 128 != 0) + partial-block row masking.
    kx4, ky4, km4 = jax.random.split(jax.random.PRNGKey(3), 3)
    shape4 = (2, 3, 7, 11)
    X4 = jax.random.normal(kx4, shape4, dtype=jnp.float32)
    Y4 = jax.random.normal(ky4, shape4, dtype=jnp.float32)
    mask4 = jax.random.uniform(km4, shape4, dtype=jnp.float32)
    score4 = jax.block_until_ready(hpfl2(X4, Y4, mask4))
    ref4 = _reference(X4, Y4, mask4)
    assert jnp.allclose(score4, ref4, rtol=1e-5, atol=1e-6), (score4, ref4)

    print("KERNEL_OK")
</pallas_src>

<mosaic_0001>
module attributes {stable_mosaic.version = 11 : i64} {
  func.func @_masked_l2_kernel(%arg0: i32, %arg1: i32, %arg2: memref<16x128xf32, #tpu.memory_space<vmem>>, %arg3: memref<16x128xf32, #tpu.memory_space<vmem>>, %arg4: memref<16x128xf32, #tpu.memory_space<vmem>>, %arg5: memref<8x128xf32, #tpu.memory_space<vmem>>, %arg6: memref<8x128xf32, #tpu.memory_space<vmem>>) attributes {dimension_semantics = [#tpu.dimension_semantics<parallel>, #tpu.dimension_semantics<arbitrary>], iteration_bounds = array<i64: 1, 1>, scalar_prefetch = 0 : i64, scratch_operands = 1 : i64, tpu.core_type = #tpu.core_type<tc>, window_params = [{transform_indices = @transform_0, window_bounds = array<i64: 16, 128>}, {transform_indices = @transform_1, window_bounds = array<i64: 16, 128>}, {transform_indices = @transform_2, window_bounds = array<i64: 16, 128>}, {transform_indices = @transform_3, window_bounds = array<i64: 8, 128>}]} {
    %c0_i32 = arith.constant 0 : i32
    %0 = arith.cmpi eq, %arg1, %c0_i32 : i32
    %1 = arith.extui %0 : i1 to i32
    %c0_i32_0 = arith.constant 0 : i32
    %2 = arith.cmpi ne, %1, %c0_i32_0 : i32
    scf.if %2 {
      %cst_12 = arith.constant 0.000000e+00 : f32
      %17 = vector.broadcast %cst_12 : f32 to vector<8x128xf32>
      %c0_13 = arith.constant 0 : index
      %c0_14 = arith.constant 0 : index
      %18 = vector.load %arg6[%c0_13, %c0_14] : memref<8x128xf32, #tpu.memory_space<vmem>>, vector<8x128xf32>
      tpu.vector_store %arg6[%c0_13, %c0_14], %17 {strides = array<i32>} : memref<8x128xf32, #tpu.memory_space<vmem>>, vector<8x128xf32>,
    } else {
    }
    %c0 = arith.constant 0 : index
    %c0_1 = arith.constant 0 : index
    %3 = vector.load %arg2[%c0, %c0_1] : memref<16x128xf32, #tpu.memory_space<vmem>>, vector<16x128xf32>
    %c0_2 = arith.constant 0 : index
    %c0_3 = arith.constant 0 : index
    %4 = vector.load %arg3[%c0_2, %c0_3] : memref<16x128xf32, #tpu.memory_space<vmem>>, vector<16x128xf32>
    %5 = arith.subf %3, %4 : vector<16x128xf32>
    %6 = arith.mulf %5, %5 : vector<16x128xf32>
    %c0_4 = arith.constant 0 : index
    %c0_5 = arith.constant 0 : index
    %7 = vector.load %arg4[%c0_4, %c0_5] : memref<16x128xf32, #tpu.memory_space<vmem>>, vector<16x128xf32>
    %8 = arith.mulf %6, %7 : vector<16x128xf32>
    %c0_6 = arith.constant 0 : index
    %c0_7 = arith.constant 0 : index
    %9 = vector.load %arg6[%c0_6, %c0_7] : memref<8x128xf32, #tpu.memory_space<vmem>>, vector<8x128xf32>
    %10 = vector.shape_cast %8 : vector<16x128xf32> to vector<2x8x128xf32>
    %cst = arith.constant dense<0.000000e+00> : vector<8x128xf32>
    %11 = vector.multi_reduction <add>, %10, %cst [0] : vector<2x8x128xf32> to vector<8x128xf32>
    %12 = arith.addf %9, %11 : vector<8x128xf32>
    %c0_8 = arith.constant 0 : index
    %c0_9 = arith.constant 0 : index
    %13 = vector.load %arg6[%c0_8, %c0_9] : memref<8x128xf32, #tpu.memory_space<vmem>>, vector<8x128xf32>
    tpu.vector_store %arg6[%c0_8, %c0_9], %12 {strides = array<i32>} : memref<8x128xf32, #tpu.memory_space<vmem>>, vector<8x128xf32>,
    %c0_i32_10 = arith.constant 0 : i32
    %14 = arith.cmpi eq, %arg1, %c0_i32_10 : i32
    %15 = arith.extui %14 : i1 to i32
    %c0_i32_11 = arith.constant 0 : i32
    %16 = arith.cmpi ne, %15, %c0_i32_11 : i32
    scf.if %16 {
      %c0_12 = arith.constant 0 : index
      %c0_13 = arith.constant 0 : index
      %17 = vector.load %arg6[%c0_12, %c0_13] : memref<8x128xf32, #tpu.memory_space<vmem>>, vector<8x128xf32>
      %c0_14 = arith.constant 0 : index
      %c0_15 = arith.constant 0 : index
      %18 = vector.load %arg5[%c0_14, %c0_15] : memref<8x128xf32, #tpu.memory_space<vmem>>, vector<8x128xf32>
      tpu.vector_store %arg5[%c0_14, %c0_15], %17 {strides = array<i32>} : memref<8x128xf32, #tpu.memory_space<vmem>>, vector<8x128xf32>,
    } else {
    }
    return
  }
  func.func @transform_0(%arg0: i32, %arg1: i32) -> (i32, i32) {
    %c1_i32 = arith.constant 1 : i32
    %0 = arith.muli %arg0, %c1_i32 : i32
    %1 = arith.addi %0, %arg1 : i32
    %c0_i32 = arith.constant 0 : i32
    %2 = arith.minsi %1, %c0_i32 : i32
    %c0_i32_0 = arith.constant 0 : i32
    %c0_i32_1 = arith.constant 0 : i32
    return %2, %c0_i32_0 : i32, i32
  }
  func.func @transform_1(%arg0: i32, %arg1: i32) -> (i32, i32) {
    %c1_i32 = arith.constant 1 : i32
    %0 = arith.muli %arg0, %c1_i32 : i32
    %1 = arith.addi %0, %arg1 : i32
    %c0_i32 = arith.constant 0 : i32
    %2 = arith.minsi %1, %c0_i32 : i32
    %c0_i32_0 = arith.constant 0 : i32
    %c0_i32_1 = arith.constant 0 : i32
    return %2, %c0_i32_0 : i32, i32
  }
  func.func @transform_2(%arg0: i32, %arg1: i32) -> (i32, i32) {
    %c1_i32 = arith.constant 1 : i32
    %0 = arith.muli %arg0, %c1_i32 : i32
    %1 = arith.addi %0, %arg1 : i32
    %c0_i32 = arith.constant 0 : i32
    %2 = arith.minsi %1, %c0_i32 : i32
    %c0_i32_0 = arith.constant 0 : i32
    %c0_i32_1 = arith.constant 0 : i32
    return %2, %c0_i32_0 : i32, i32
  }
  func.func @transform_3(%arg0: i32, %arg1: i32) -> (i32, i32) {
    %c0_i32 = arith.constant 0 : i32
    %c0_i32_0 = arith.constant 0 : i32
    return %arg0, %c0_i32 : i32, i32
  }
}

</mosaic_0001>

<bundles_post_ra>
// kernel: tpu_custom_call.1
= control target key start
LH: loop header
LB: loop body
LE: loop exit
PB: predicated region body
PF: predicated region fallthrough
CT: control target
= control target key end

     0   :  { %8 = vsyncpa [#allocation4], 0  ;;  %s264_s0 = inlined_call_operand.hbm [shape: f32[16,128], index: 0, kind: input, shape index: {}]   ;;  %s265_s1 = inlined_call_operand.hbm [shape: f32[16,128], index: 1, kind: input, shape index: {}]   ;;  %s266_s2 = inlined_call_operand.hbm [shape: f32[16,128], index: 2, kind: input, shape index: {}]   ;;  %s267_s3 = inlined_call_operand.hbm [shape: f32[8,128], index: 3, kind: output, shape index: {}]  }
   0x1   :  { %9 = vsyncpa [#allocation7], 0 }
   0x2   :  { %10 = vsyncpa [#allocation5], 0  ;;  %s226_s12 = smov [#allocation6]   ;;  %s227_s14 = smov [#allocation3]  }
   0x3   :  { %s40_s13 = sshll.u32 %s226_s12, 4  ;;  %s22_s15 = sshll.u32 %s227_s14, 4  ;;  %s41_s13 = int_to_ptr.vmem [resolvable:$true] %s40_s13  ;;  %s23_s15 = int_to_ptr.vmem [resolvable:$true] %s22_s15 }
   0x4   :  { %s148_s16 = scalar_lea.vmem %s41_s13, 256  ;;  %p153_p1 = scmp.lt.s32.totalorder %s41_s13, %s41_s13 }
   0x5   :  { %p149_p0 = scmp.ne.s32.totalorder %s41_s13, %s148_s16  ;;  %p154_p2 = scmp.lt.s32.totalorder %s148_s16, %s148_s16 }
   0x7   :  { %p155_p3 = por %p154_p2, %p153_p1 }
   0x9   :  { %p156_p4 = pnand %p155_p3, %p149_p0 }
   0xb   :  { %159 = shalt.err (!%p156_p4)
}
   0xc   :  { %s228_s17 = smov 128   ;;  %s229_s18 = smov 8  }
   0xd   :  { %46 = dma.hbm_to_vmem [thread:$0]  %s265_s1, 256, %s41_s13, [#allocation7], %s228_s17, %s228_s17, %s229_s18  }
   0xe   :  { %s168_s21 = scalar_lea.vmem %s23_s15, 256  ;;  %p173_p6 = scmp.lt.s32.totalorder %s23_s15, %s23_s15 }
   0xf   :  { %p169_p5 = scmp.ne.s32.totalorder %s23_s15, %s168_s21  ;;  %p174_p7 = scmp.lt.s32.totalorder %s168_s21, %s168_s21 }
  0x11   :  { %p175_p8 = por %p174_p7, %p173_p6 }
  0x13   :  { %p176_p9 = pnand %p175_p8, %p169_p5 }
  0x15   :  { %179 = shalt.err (!%p176_p9)
}
  0x16   :  { %28 = dma.hbm_to_vmem [thread:$0]  %s264_s0, 256, %s23_s15, [#allocation4], %s228_s17, %s228_s17, %s229_s18  }
  0x17   :  { %s230_s24 = smov [#allocation8]  }
  0x18   :  { %s58_s25 = sshll.u32 %s230_s24, 4  ;;  %s59_s25 = int_to_ptr.vmem [resolvable:$true] %s58_s25 }
  0x19   :  { %s188_s26 = scalar_lea.vmem %s59_s25, 256  ;;  %p193_p11 = scmp.lt.s32.totalorder %s59_s25, %s59_s25 }
  0x1a   :  { %p189_p10 = scmp.ne.s32.totalorder %s59_s25, %s188_s26  ;;  %p194_p12 = scmp.lt.s32.totalorder %s188_s26, %s188_s26 }
  0x1c   :  { %p195_p13 = por %p194_p12, %p193_p11 }
  0x1e   :  { %p196_p0 = pnand %p195_p13, %p189_p10 }
  0x20   :  { %199 = shalt.err (!%p196_p0)
}
  0x21   :  { %64 = dma.hbm_to_vmem [thread:$0]  %s266_s2, 256, %s59_s25, [#allocation7], %s228_s17, %s228_s17, %s229_s18  }
  0x22   :  { %220 = dma.done.wait [#allocation4], 256  }
  0x23   :  { %221 = vsyncadd [#allocation4], 4294967040 }
  0x24   :  { %222 = dma.done.wait [#allocation7], 512  }
  0x25   :  { %223 = vsyncadd [#allocation7], 4294966784  ;;  %v91_v0 = vld [vmem:[#allocation3] sm:$0xff]  ;;  %v92_v1 = vld [vmem:[#allocation3 + $0x8] sm:$0xff]  ;;  %s231_s0 = smov [#allocation9]  }
  0x26   :  { %v93_v2 = vld [vmem:[#allocation6] sm:$0xff]  ;;  %v94_v3 = vld [vmem:[#allocation6 + $0x8] sm:$0xff]  ;;  %v99_v6 = vld [vmem:[#allocation8] sm:$0xff]  ;;  %s118_s28 = sshll.u32 %s231_s0, 4  ;;  %s119_s28 = int_to_ptr.vmem [resolvable:$true] %s118_s28 }
  0x27   :  { %v95_v4 = vsub.f32 %v91_v0, %v93_v2  ;;  %v96_v5 = vsub.f32 %v92_v1, %v94_v3  ;;  %v100_v8 = vld [vmem:[#allocation8 + $0x8] sm:$0xff]  ;;  %s200_s2 = scalar_lea.vmem %s119_s28, 128  ;;  %p205_p2 = scmp.lt.s32.totalorder %s119_s28, %s119_s28 }
  0x28   :  { %p201_p1 = scmp.ne.s32.totalorder %s119_s28, %s200_s2  ;;  %p206_p3 = scmp.lt.s32.totalorder %s200_s2, %s200_s2 }
  0x29   :  { %v97_v7 = vmul.f32 %v95_v4, %v95_v4  ;;  %v98_v9 = vmul.f32 %v96_v5, %v96_v5 }
  0x2a   :  { %p207_p4 = por %p206_p3, %p205_p2 }
  0x2b   :  { %v101_v10 = vmul.f32 %v99_v6, %v97_v7  ;;  %v102_v11 = vmul.f32 %v100_v8, %v98_v9 }
  0x2c   :  { %p208_p5 = pnand %p207_p4, %p201_p1 }
  0x2d   :  { %v104_v12 = vadd.f32 %v102_v11, %v101_v10 }
  0x2f   :  { %111 = vst [vmem:[#allocation9] sm:$0xff] %v104_v12 }
  0x30   :  { %211 = shalt.err (!%p208_p5)
}
  0x31   :  { %121 = dma.vmem_to_hbm [thread:$0]  %s119_s28, 128, %s267_s3, [#allocation5]  }
  0x32   :  { %224 = dma.done.wait [#allocation5], 128  }
  0x33   :  { %225 = vsyncadd [#allocation5], 4294967168 }
  0x34   :  { %125 = vsyncpa [#allocation4], 1 }
  0x35   :  { %126 = vsyncpa [#allocation7], 1 }
  0x36   :  { %127 = vsyncpa [#allocation5], 1 }

</bundles_post_ra>
